<compile_context>
chip_gen: v5e
topology: v5e:2x2
jax: 0.10.0
libtpu: 0.0.40
codegen_flags: <defaults>
</compile_context>

<pallas_src>
import functools

import jax
import jax.numpy as jnp
from jax.experimental import pallas as pl
from jax.experimental.pallas import tpu as pltpu


# ----------------------------- Fused kernel -------------------------------- #

def _lsa_fused_kernel(x_ref, w_qkv_ref, w_out_ref, b_out_ref, o_ref, *,
                      batch, seq, heads, dim_head):
    bn = batch * seq
    dim = x_ref.shape[1]
    inner = heads * dim_head

    x = x_ref[...]                                            # (B*N, dim) f32

    # Single fused QKV projection (one MXU matmul, full M occupancy).
    # The temperature scale is already folded into the Q columns of w_qkv.
    qkv = jnp.dot(x, w_qkv_ref[...],
                  preferred_element_type=jnp.float32)         # (B*N, 3*inner)

    # Diagonal mask, built once (shared by every (b, h) attention).
    row = jax.lax.broadcasted_iota(jnp.int32, (seq, seq), 0)
    col = jax.lax.broadcasted_iota(jnp.int32, (seq, seq), 1)
    diag = (row == col)[None]                                 # (1, N, N)
    neg = jnp.float32(-1e30)     # finite; exp() underflows to exactly 0

    # Running output accumulator, initialised with the broadcast bias
    # (hoisted out of the head loop).
    out = jnp.broadcast_to(b_out_ref[...], (bn, dim)).astype(jnp.float32)

    for h in range(heads):                                    # static unroll
        q0 = h * dim_head
        # Head slices; reshape (B*N, dh) -> (B, N, dh) is a free leading split.
        qh = qkv[:, q0:q0 + dim_head].reshape(batch, seq, dim_head)
        kh = qkv[:, inner + q0:inner + q0 + dim_head].reshape(
            batch, seq, dim_head)
        vh = qkv[:, 2 * inner + q0:2 * inner + q0 + dim_head].reshape(
            batch, seq, dim_head)

        # Q.K^T batched over the batch dim (no explicit transpose of k).
        dots = jnp.einsum('bnd,bmd->bnm', qh, kh,
                          preferred_element_type=jnp.float32)  # (B, N, N)
        dots = jnp.where(diag, neg, dots)

        # Softmax over the last axis.
        dots = dots - jnp.max(dots, axis=-1, keepdims=True)
        e = jnp.exp(dots)
        # Exact reciprocal (approx=True would risk the 1e-4 budget).
        attn = e * pl.reciprocal(jnp.sum(e, axis=-1, keepdims=True))

        oh = jnp.einsum('bnm,bmd->bnd', attn, vh,
                        preferred_element_type=jnp.float32)    # (B, N, dh)
        oh = oh.reshape(bn, dim_head)                          # free merge

        # Accumulate directly into the output projection through the
        # sublane-aligned row slice of w_out (offsets are multiples of 8);
        # no lane-axis concat of head outputs.
        out = out + jnp.dot(oh, w_out_ref[q0:q0 + dim_head, :],
                            preferred_element_type=jnp.float32)

    o_ref[...] = out.astype(o_ref.dtype)


# ------------------------------ Wrapper ------------------------------------ #

def prepare_params(params, heads, dim_head):
    """One-time (init-level) prep: fold exp(log_temperature) into Q columns."""
    inner = heads * dim_head
    scale = jnp.exp(params["log_temperature"]).astype(jnp.float32)
    return {
        "w_qkv": params["w_qkv"].at[:, :inner].multiply(scale),
        "w_out": params["w_out"],
        "b_out": params["b_out"],
    }


def lsa_forward(x, prepared, heads, dim_head):
    """x: (B, N, dim) -> (B, N, dim). Single program, batch folded into M."""
    B, N, dim = x.shape
    kernel = functools.partial(_lsa_fused_kernel, batch=B, seq=N,
                               heads=heads, dim_head=dim_head)
    vmem = pl.BlockSpec(memory_space=pltpu.MemorySpace.VMEM)

    out2d = pl.pallas_call(
        kernel,
        out_shape=jax.ShapeDtypeStruct((B * N, dim), x.dtype),
        in_specs=[vmem, vmem, vmem, vmem],
        out_specs=vmem,
    )(x.reshape(B * N, dim), prepared["w_qkv"], prepared["w_out"],
      prepared["b_out"])

    return out2d.reshape(B, N, dim)


# ------------------------------ Reference ----------------------------------- #

def lsa_reference(x, params, heads, dim_head):
    B, N, dim = x.shape
    inner = heads * dim_head
    hi = jax.lax.Precision.HIGHEST
    qkv = jnp.dot(x.reshape(B * N, dim), params["w_qkv"], precision=hi)
    qkv = qkv.reshape(B, N, 3 * inner)
    q, k, v = jnp.split(qkv, 3, axis=-1)
    sh = lambda t: t.reshape(B, N, heads, dim_head).transpose(0, 2, 1, 3)
    q, k, v = map(sh, (q, k, v))
    scale = jnp.exp(params["log_temperature"])
    dots = jnp.einsum("bhnd,bhmd->bhnm", q, k, precision=hi) * scale
    eye = jnp.eye(N, dtype=bool)
    dots = jnp.where(eye[None, None], -jnp.finfo(jnp.float32).max, dots)
    attn = jax.nn.softmax(dots, axis=-1)
    out = jnp.einsum("bhnm,bhmd->bhnd", attn, v, precision=hi)
    out = out.transpose(0, 2, 1, 3).reshape(B * N, inner)
    out = jnp.dot(out, params["w_out"], precision=hi) + params["b_out"]
    return out.reshape(B, N, dim)


# --------------------------------- Main ------------------------------------- #

if __name__ == "__main__":
    B, N, dim = 2, 8, 32
    heads, dim_head = 4, 16
    inner = heads * dim_head

    key = jax.random.PRNGKey(0)
    kx, kqkv, kout, kb = jax.random.split(key, 4)

    x = jax.random.normal(kx, (B, N, dim), dtype=jnp.float32)

    params = {
        # nn.Linear(dim, inner*3, bias=False) -> effective weight (dim, 3*inner)
        "w_qkv": jax.random.normal(kqkv, (dim, 3 * inner), jnp.float32) * 0.05,
        # nn.Linear(inner, dim) with bias
        "w_out": jax.random.normal(kout, (inner, dim), jnp.float32) * 0.05,
        "b_out": jax.random.normal(kb, (1, dim), jnp.float32) * 0.01,
        # nn.Parameter(log(dim_head ** -0.5))
        "log_temperature": jnp.log(jnp.asarray(dim_head ** -0.5, jnp.float32)),
    }

    prepared = prepare_params(params, heads, dim_head)   # init-time, not per call

    out = lsa_forward(x, prepared, heads, dim_head)
    out = jax.block_until_ready(out)

    ref = lsa_reference(x, params, heads, dim_head)
    assert out.shape == (B, N, dim), out.shape
    assert jnp.allclose(out, ref, atol=1e-4, rtol=1e-4), (
        float(jnp.max(jnp.abs(out - ref))))

    print("KERNEL_OK")
</pallas_src>

<mosaic_0001>
module attributes {stable_mosaic.version = 11 : i64} {
  func.func @_lsa_fused_kernel(%arg0: memref<16x32xf32, #tpu.memory_space<vmem>>, %arg1: memref<32x192xf32, #tpu.memory_space<vmem>>, %arg2: memref<64x32xf32, #tpu.memory_space<vmem>>, %arg3: memref<1x32xf32, #tpu.memory_space<vmem>>, %arg4: memref<16x32xf32, #tpu.memory_space<vmem>>) attributes {dimension_semantics = [], scalar_prefetch = 0 : i64, scratch_operands = 0 : i64, tpu.core_type = #tpu.core_type<tc>} {
    %c0 = arith.constant 0 : index
    %c0_0 = arith.constant 0 : index
    %0 = vector.load %arg0[%c0, %c0_0] : memref<16x32xf32, #tpu.memory_space<vmem>>, vector<16x32xf32>
    %c0_1 = arith.constant 0 : index
    %c0_2 = arith.constant 0 : index
    %1 = vector.load %arg1[%c0_1, %c0_2] : memref<32x192xf32, #tpu.memory_space<vmem>>, vector<32x192xf32>
    %cst = arith.constant dense<0.000000e+00> : vector<16x192xf32>
    %2 = tpu.matmul %0, %1, %cst {dimension_numbers = #tpu.dot_dimension_numbers<[1], [0], [0], [1], [0, 0, 1, 1], [], []>} : vector<16x32xf32>, vector<32x192xf32>, vector<16x192xf32> -> vector<16x192xf32>
    %3 = tpu.iota {dimensions = array<i32: 0>} : vector<8x8xi32>
    %4 = tpu.iota {dimensions = array<i32: 1>} : vector<8x8xi32>
    %5 = arith.cmpi eq, %3, %4 : vector<8x8xi32>
    %6 = vector.shape_cast %5 : vector<8x8xi1> to vector<1x8x8xi1>
    %c0_3 = arith.constant 0 : index
    %c0_4 = arith.constant 0 : index
    %7 = vector.load %arg3[%c0_3, %c0_4] : memref<1x32xf32, #tpu.memory_space<vmem>>, vector<1x32xf32>
    %8 = vector.shape_cast %7 : vector<1x32xf32> to vector<1x32xf32>
    %9 = vector.broadcast %8 : vector<1x32xf32> to vector<16x32xf32>
    %10 = vector.extract_strided_slice %2 {offsets = [0, 0], sizes = [16, 16], strides = [1, 1]} : vector<16x192xf32> to vector<16x16xf32>
    %11 = vector.shape_cast %10 : vector<16x16xf32> to vector<2x8x16xf32>
    %12 = vector.extract_strided_slice %2 {offsets = [0, 64], sizes = [16, 16], strides = [1, 1]} : vector<16x192xf32> to vector<16x16xf32>
    %13 = vector.shape_cast %12 : vector<16x16xf32> to vector<2x8x16xf32>
    %14 = vector.extract_strided_slice %2 {offsets = [0, 128], sizes = [16, 16], strides = [1, 1]} : vector<16x192xf32> to vector<16x16xf32>
    %15 = vector.shape_cast %14 : vector<16x16xf32> to vector<2x8x16xf32>
    "tpu.trace_start"() <{level = 10 : i32, message = "bnd,bmd->bnm"}> : () -> ()
    %cst_5 = arith.constant dense<0.000000e+00> : vector<2x8x8xf32>
    %16 = tpu.matmul %11, %13, %cst_5 {dimension_numbers = #tpu.dot_dimension_numbers<[2], [2], [1], [1], [0, 0, 0, 1, 1, 1], [0], [0]>} : vector<2x8x16xf32>, vector<2x8x16xf32>, vector<2x8x8xf32> -> vector<2x8x8xf32>
    %cst_6 = arith.constant -1.000000e+30 : f32
    "tpu.trace_stop"() : () -> ()
    %17 = vector.shape_cast %6 : vector<1x8x8xi1> to vector<1x8x8xi1>
    %18 = vector.broadcast %17 : vector<1x8x8xi1> to vector<2x8x8xi1>
    %19 = vector.broadcast %cst_6 : f32 to vector<2x8x8xf32>
    %20 = arith.select %18, %19, %16 : vector<2x8x8xi1>, vector<2x8x8xf32>
    %cst_7 = arith.constant dense<0xFF800000> : vector<2x8xf32>
    %21 = vector.multi_reduction <maximumf>, %20, %cst_7 [2] : vector<2x8x8xf32> to vector<2x8xf32>
    %22 = vector.shape_cast %21 : vector<2x8xf32> to vector<2x8x1xf32>
    %23 = vector.broadcast %22 : vector<2x8x1xf32> to vector<2x8x8xf32>
    %24 = arith.subf %20, %23 : vector<2x8x8xf32>
    %25 = math.exp %24 : vector<2x8x8xf32>
    %cst_8 = arith.constant dense<0.000000e+00> : vector<2x8xf32>
    %26 = vector.multi_reduction <add>, %25, %cst_8 [2] : vector<2x8x8xf32> to vector<2x8xf32>
    %27 = vector.shape_cast %26 : vector<2x8xf32> to vector<2x8x1xf32>
    %28 = tpu.reciprocal %27 : vector<2x8x1xf32> -> vector<2x8x1xf32>
    %29 = vector.broadcast %28 : vector<2x8x1xf32> to vector<2x8x8xf32>
    %30 = arith.mulf %25, %29 : vector<2x8x8xf32>
    "tpu.trace_start"() <{level = 10 : i32, message = "bnm,bmd->bnd"}> : () -> ()
    %cst_9 = arith.constant dense<0.000000e+00> : vector<2x8x16xf32>
    %31 = tpu.matmul %30, %15, %cst_9 {dimension_numbers = #tpu.dot_dimension_numbers<[2], [1], [1], [2], [0, 0, 0, 1, 1, 2], [0], [0]>} : vector<2x8x8xf32>, vector<2x8x16xf32>, vector<2x8x16xf32> -> vector<2x8x16xf32>
    "tpu.trace_stop"() : () -> ()
    %32 = vector.shape_cast %31 : vector<2x8x16xf32> to vector<16x16xf32>
    %c0_10 = arith.constant 0 : index
    %c0_11 = arith.constant 0 : index
    %33 = vector.load %arg2[%c0_10, %c0_11] : memref<64x32xf32, #tpu.memory_space<vmem>>, vector<16x32xf32>
    %cst_12 = arith.constant dense<0.000000e+00> : vector<16x32xf32>
    %34 = tpu.matmul %32, %33, %cst_12 {dimension_numbers = #tpu.dot_dimension_numbers<[1], [0], [0], [1], [0, 0, 1, 1], [], []>} : vector<16x16xf32>, vector<16x32xf32>, vector<16x32xf32> -> vector<16x32xf32>
    %35 = arith.addf %9, %34 : vector<16x32xf32>
    %36 = vector.extract_strided_slice %2 {offsets = [0, 16], sizes = [16, 16], strides = [1, 1]} : vector<16x192xf32> to vector<16x16xf32>
    %37 = vector.shape_cast %36 : vector<16x16xf32> to vector<2x8x16xf32>
    %38 = vector.extract_strided_slice %2 {offsets = [0, 80], sizes = [16, 16], strides = [1, 1]} : vector<16x192xf32> to vector<16x16xf32>
    %39 = vector.shape_cast %38 : vector<16x16xf32> to vector<2x8x16xf32>
    %40 = vector.extract_strided_slice %2 {offsets = [0, 144], sizes = [16, 16], strides = [1, 1]} : vector<16x192xf32> to vector<16x16xf32>
    %41 = vector.shape_cast %40 : vector<16x16xf32> to vector<2x8x16xf32>
    "tpu.trace_start"() <{level = 10 : i32, message = "bnd,bmd->bnm"}> : () -> ()
    %cst_13 = arith.constant dense<0.000000e+00> : vector<2x8x8xf32>
    %42 = tpu.matmul %37, %39, %cst_13 {dimension_numbers = #tpu.dot_dimension_numbers<[2], [2], [1], [1], [0, 0, 0, 1, 1, 1], [0], [0]>} : vector<2x8x16xf32>, vector<2x8x16xf32>, vector<2x8x8xf32> -> vector<2x8x8xf32>
    %cst_14 = arith.constant -1.000000e+30 : f32
    "tpu.trace_stop"() : () -> ()
    %43 = vector.shape_cast %6 : vector<1x8x8xi1> to vector<1x8x8xi1>
    %44 = vector.broadcast %43 : vector<1x8x8xi1> to vector<2x8x8xi1>
    %45 = vector.broadcast %cst_14 : f32 to vector<2x8x8xf32>
    %46 = arith.select %44, %45, %42 : vector<2x8x8xi1>, vector<2x8x8xf32>
    %cst_15 = arith.constant dense<0xFF800000> : vector<2x8xf32>
    %47 = vector.multi_reduction <maximumf>, %46, %cst_15 [2] : vector<2x8x8xf32> to vector<2x8xf32>
    %48 = vector.shape_cast %47 : vector<2x8xf32> to vector<2x8x1xf32>
    %49 = vector.broadcast %48 : vector<2x8x1xf32> to vector<2x8x8xf32>
    %50 = arith.subf %46, %49 : vector<2x8x8xf32>
    %51 = math.exp %50 : vector<2x8x8xf32>
    %cst_16 = arith.constant dense<0.000000e+00> : vector<2x8xf32>
    %52 = vector.multi_reduction <add>, %51, %cst_16 [2] : vector<2x8x8xf32> to vector<2x8xf32>
    %53 = vector.shape_cast %52 : vector<2x8xf32> to vector<2x8x1xf32>
    %54 = tpu.reciprocal %53 : vector<2x8x1xf32> -> vector<2x8x1xf32>
    %55 = vector.broadcast %54 : vector<2x8x1xf32> to vector<2x8x8xf32>
    %56 = arith.mulf %51, %55 : vector<2x8x8xf32>
    "tpu.trace_start"() <{level = 10 : i32, message = "bnm,bmd->bnd"}> : () -> ()
    %cst_17 = arith.constant dense<0.000000e+00> : vector<2x8x16xf32>
    %57 = tpu.matmul %56, %41, %cst_17 {dimension_numbers = #tpu.dot_dimension_numbers<[2], [1], [1], [2], [0, 0, 0, 1, 1, 2], [0], [0]>} : vector<2x8x8xf32>, vector<2x8x16xf32>, vector<2x8x16xf32> -> vector<2x8x16xf32>
    "tpu.trace_stop"() : () -> ()
    %58 = vector.shape_cast %57 : vector<2x8x16xf32> to vector<16x16xf32>
    %c16 = arith.constant 16 : index
    %c0_18 = arith.constant 0 : index
    %59 = vector.load %arg2[%c16, %c0_18] : memref<64x32xf32, #tpu.memory_space<vmem>>, vector<16x32xf32>
    %cst_19 = arith.constant dense<0.000000e+00> : vector<16x32xf32>
    %60 = tpu.matmul %58, %59, %cst_19 {dimension_numbers = #tpu.dot_dimension_numbers<[1], [0], [0], [1], [0, 0, 1, 1], [], []>} : vector<16x16xf32>, vector<16x32xf32>, vector<16x32xf32> -> vector<16x32xf32>
    %61 = arith.addf %35, %60 : vector<16x32xf32>
    %62 = vector.extract_strided_slice %2 {offsets = [0, 32], sizes = [16, 16], strides = [1, 1]} : vector<16x192xf32> to vector<16x16xf32>
    %63 = vector.shape_cast %62 : vector<16x16xf32> to vector<2x8x16xf32>
    %64 = vector.extract_strided_slice %2 {offsets = [0, 96], sizes = [16, 16], strides = [1, 1]} : vector<16x192xf32> to vector<16x16xf32>
    %65 = vector.shape_cast %64 : vector<16x16xf32> to vector<2x8x16xf32>
    %66 = vector.extract_strided_slice %2 {offsets = [0, 160], sizes = [16, 16], strides = [1, 1]} : vector<16x192xf32> to vector<16x16xf32>
    %67 = vector.shape_cast %66 : vector<16x16xf32> to vector<2x8x16xf32>
    "tpu.trace_start"() <{level = 10 : i32, message = "bnd,bmd->bnm"}> : () -> ()
    %cst_20 = arith.constant dense<0.000000e+00> : vector<2x8x8xf32>
    %68 = tpu.matmul %63, %65, %cst_20 {dimension_numbers = #tpu.dot_dimension_numbers<[2], [2], [1], [1], [0, 0, 0, 1, 1, 1], [0], [0]>} : vector<2x8x16xf32>, vector<2x8x16xf32>, vector<2x8x8xf32> -> vector<2x8x8xf32>
    %cst_21 = arith.constant -1.000000e+30 : f32
    "tpu.trace_stop"() : () -> ()
    %69 = vector.shape_cast %6 : vector<1x8x8xi1> to vector<1x8x8xi1>
    %70 = vector.broadcast %69 : vector<1x8x8xi1> to vector<2x8x8xi1>
    %71 = vector.broadcast %cst_21 : f32 to vector<2x8x8xf32>
    %72 = arith.select %70, %71, %68 : vector<2x8x8xi1>, vector<2x8x8xf32>
    %cst_22 = arith.constant dense<0xFF800000> : vector<2x8xf32>
    %73 = vector.multi_reduction <maximumf>, %72, %cst_22 [2] : vector<2x8x8xf32> to vector<2x8xf32>
    %74 = vector.shape_cast %73 : vector<2x8xf32> to vector<2x8x1xf32>
    %75 = vector.broadcast %74 : vector<2x8x1xf32> to vector<2x8x8xf32>
    %76 = arith.subf %72, %75 : vector<2x8x8xf32>
    %77 = math.exp %76 : vector<2x8x8xf32>
    %cst_23 = arith.constant dense<0.000000e+00> : vector<2x8xf32>
    %78 = vector.multi_reduction <add>, %77, %cst_23 [2] : vector<2x8x8xf32> to vector<2x8xf32>
    %79 = vector.shape_cast %78 : vector<2x8xf32> to vector<2x8x1xf32>
    %80 = tpu.reciprocal %79 : vector<2x8x1xf32> -> vector<2x8x1xf32>
    %81 = vector.broadcast %80 : vector<2x8x1xf32> to vector<2x8x8xf32>
    %82 = arith.mulf %77, %81 : vector<2x8x8xf32>
    "tpu.trace_start"() <{level = 10 : i32, message = "bnm,bmd->bnd"}> : () -> ()
    %cst_24 = arith.constant dense<0.000000e+00> : vector<2x8x16xf32>
    %83 = tpu.matmul %82, %67, %cst_24 {dimension_numbers = #tpu.dot_dimension_numbers<[2], [1], [1], [2], [0, 0, 0, 1, 1, 2], [0], [0]>} : vector<2x8x8xf32>, vector<2x8x16xf32>, vector<2x8x16xf32> -> vector<2x8x16xf32>
    "tpu.trace_stop"() : () -> ()
    %84 = vector.shape_cast %83 : vector<2x8x16xf32> to vector<16x16xf32>
    %c32 = arith.constant 32 : index
    %c0_25 = arith.constant 0 : index
    %85 = vector.load %arg2[%c32, %c0_25] : memref<64x32xf32, #tpu.memory_space<vmem>>, vector<16x32xf32>
    %cst_26 = arith.constant dense<0.000000e+00> : vector<16x32xf32>
    %86 = tpu.matmul %84, %85, %cst_26 {dimension_numbers = #tpu.dot_dimension_numbers<[1], [0], [0], [1], [0, 0, 1, 1], [], []>} : vector<16x16xf32>, vector<16x32xf32>, vector<16x32xf32> -> vector<16x32xf32>
    %87 = arith.addf %61, %86 : vector<16x32xf32>
    %88 = vector.extract_strided_slice %2 {offsets = [0, 48], sizes = [16, 16], strides = [1, 1]} : vector<16x192xf32> to vector<16x16xf32>
    %89 = vector.shape_cast %88 : vector<16x16xf32> to vector<2x8x16xf32>
    %90 = vector.extract_strided_slice %2 {offsets = [0, 112], sizes = [16, 16], strides = [1, 1]} : vector<16x192xf32> to vector<16x16xf32>
    %91 = vector.shape_cast %90 : vector<16x16xf32> to vector<2x8x16xf32>
    %92 = vector.extract_strided_slice %2 {offsets = [0, 176], sizes = [16, 16], strides = [1, 1]} : vector<16x192xf32> to vector<16x16xf32>
    %93 = vector.shape_cast %92 : vector<16x16xf32> to vector<2x8x16xf32>
    "tpu.trace_start"() <{level = 10 : i32, message = "bnd,bmd->bnm"}> : () -> ()
    %cst_27 = arith.constant dense<0.000000e+00> : vector<2x8x8xf32>
    %94 = tpu.matmul %89, %91, %cst_27 {dimension_numbers = #tpu.dot_dimension_numbers<[2], [2], [1], [1], [0, 0, 0, 1, 1, 1], [0], [0]>} : vector<2x8x16xf32>, vector<2x8x16xf32>, vector<2x8x8xf32> -> vector<2x8x8xf32>
    %cst_28 = arith.constant -1.000000e+30 : f32
    "tpu.trace_stop"() : () -> ()
    %95 = vector.shape_cast %6 : vector<1x8x8xi1> to vector<1x8x8xi1>
    %96 = vector.broadcast %95 : vector<1x8x8xi1> to vector<2x8x8xi1>
    %97 = vector.broadcast %cst_28 : f32 to vector<2x8x8xf32>
    %98 = arith.select %96, %97, %94 : vector<2x8x8xi1>, vector<2x8x8xf32>
    %cst_29 = arith.constant dense<0xFF800000> : vector<2x8xf32>
    %99 = vector.multi_reduction <maximumf>, %98, %cst_29 [2] : vector<2x8x8xf32> to vector<2x8xf32>
    %100 = vector.shape_cast %99 : vector<2x8xf32> to vector<2x8x1xf32>
    %101 = vector.broadcast %100 : vector<2x8x1xf32> to vector<2x8x8xf32>
    %102 = arith.subf %98, %101 : vector<2x8x8xf32>
    %103 = math.exp %102 : vector<2x8x8xf32>
    %cst_30 = arith.constant dense<0.000000e+00> : vector<2x8xf32>
    %104 = vector.multi_reduction <add>, %103, %cst_30 [2] : vector<2x8x8xf32> to vector<2x8xf32>
    %105 = vector.shape_cast %104 : vector<2x8xf32> to vector<2x8x1xf32>
    %106 = tpu.reciprocal %105 : vector<2x8x1xf32> -> vector<2x8x1xf32>
    %107 = vector.broadcast %106 : vector<2x8x1xf32> to vector<2x8x8xf32>
    %108 = arith.mulf %103, %107 : vector<2x8x8xf32>
    "tpu.trace_start"() <{level = 10 : i32, message = "bnm,bmd->bnd"}> : () -> ()
    %cst_31 = arith.constant dense<0.000000e+00> : vector<2x8x16xf32>
    %109 = tpu.matmul %108, %93, %cst_31 {dimension_numbers = #tpu.dot_dimension_numbers<[2], [1], [1], [2], [0, 0, 0, 1, 1, 2], [0], [0]>} : vector<2x8x8xf32>, vector<2x8x16xf32>, vector<2x8x16xf32> -> vector<2x8x16xf32>
    "tpu.trace_stop"() : () -> ()
    %110 = vector.shape_cast %109 : vector<2x8x16xf32> to vector<16x16xf32>
    %c48 = arith.constant 48 : index
    %c0_32 = arith.constant 0 : index
    %111 = vector.load %arg2[%c48, %c0_32] : memref<64x32xf32, #tpu.memory_space<vmem>>, vector<16x32xf32>
    %cst_33 = arith.constant dense<0.000000e+00> : vector<16x32xf32>
    %112 = tpu.matmul %110, %111, %cst_33 {dimension_numbers = #tpu.dot_dimension_numbers<[1], [0], [0], [1], [0, 0, 1, 1], [], []>} : vector<16x16xf32>, vector<16x32xf32>, vector<16x32xf32> -> vector<16x32xf32>
    %113 = arith.addf %87, %112 : vector<16x32xf32>
    %c0_34 = arith.constant 0 : index
    %c0_35 = arith.constant 0 : index
    %114 = vector.load %arg4[%c0_34, %c0_35] : memref<16x32xf32, #tpu.memory_space<vmem>>, vector<16x32xf32>
    tpu.vector_store %arg4[%c0_34, %c0_35], %113 {strides = array<i32>} : memref<16x32xf32, #tpu.memory_space<vmem>>, vector<16x32xf32>,
    return
  }
}

</mosaic_0001>

<bundles_post_ra>
// kernel: tpu_custom_call.1
= control target key start
LH: loop header
LB: loop body
LE: loop exit
PB: predicated region body
PF: predicated region fallthrough
CT: control target
= control target key end

     0   :  { %s1235_s0 = inlined_call_operand.vmem [shape: f32[16,32], index: 0, kind: input, shape index: {}]   ;;  %s1236_s1 = inlined_call_operand.vmem [shape: f32[32,192], index: 1, kind: input, shape index: {}]   ;;  %s1237_s2 = inlined_call_operand.vmem [shape: f32[64,32], index: 2, kind: input, shape index: {}]   ;;  %s1238_s3 = inlined_call_operand.vmem [shape: f32[1,32], index: 3, kind: input, shape index: {}]   ;;  %s1239_s4 = inlined_call_operand.hbm [shape: f32[16,32], index: 4, kind: output, shape index: {}]  }
   0x1   :  { %v26_v0 = vld [vmem:[%s1236_s1 + $0x30] sm:$0xff]  ;;  %v24_v1 = vld [vmem:[%s1236_s1 + $0x20] sm:$0xff] }
   0x2   :  { %47 = vmatpush.msra.mxu0 %v26_v0  ;;  %908 = vmatpush.msra.mxu1 %v26_v0  ;;  %v22_v2 = vld [vmem:[%s1236_s1 + $0x10] sm:$0xff] }
   0x3   :  { %9 = vsyncpa [#allocation3], 0  ;;  %v20_v3 = vld [vmem:[%s1236_s1] sm:$0xff]  ;;  %vm28_vm0 = vcmask 261120   ;;  %v19_v5 = vld [vmem:[%s1235_s0 + $0x8] sm:$0xff]  ;;  %s986_s27 = smov 64   ;;  %v81_v18 = vlaneseq }
   0x4   :  { %48 = vmatpush.msra.mxu0 %v24_v1  ;;  %909 = vmatpush.msra.mxu1 %v24_v1  ;;  %v18_v4 = vld [vmem:[%s1235_s0] sm:$0xff]  ;;  %s987_s28 = smov 112   ;;  %s988_s0 = smov 48   ;;  %v27_v8 = vld [vmem:[%s1236_s1 + $0x38] sm:$0xff]  ;;  %v25_v9 = vld [vmem:[%s1236_s1 + $0x28] sm:$0xff]  ;;  %vm93_vm1 = vcmask 130048  }
   0x5   :  { %v23_v10 = vld [vmem:[%s1236_s1 + $0x18] sm:$0xff]  ;;  %v21_v12 = vld [vmem:[%s1236_s1 + $0x8] sm:$0xff]  ;;  %v82_v19 = vshrl.u32 %v81_v18, 7  ;;  %v84_v20 = vand.u32 127, %v81_v18  ;;  %vm149_vm3 = vcmask 64512   ;;  %s989_s1 = smov 32  }
   0x6   :  { %49 = vmatpush.msra.mxu0 %v22_v2  ;;  %910 = vmatpush.msra.mxu1 %v22_v2  ;;  %s990_s11 = smov 96   ;;  %s991_s12 = smov 16  }
   0x7   :  { %vm1080_vm2 = vcmp.eq.s32.totalorder %v82_v19, %v84_v20  ;;  %s992_s13 = smov 80   ;;  %s860_s7 = sshll.u32 %s1239_s4, 4  ;;  %s861_s7 = int_to_ptr.hbm [resolvable:$true] %s860_s7 }
   0x8   :  { %50 = vmatpush.msra.mxu0 %v20_v3  ;;  %911 = vmatpush.msra.mxu1 %v20_v3  ;;  %s994_s8 = smov 128   ;;  %s995_s9 = smov 8  }
   0x9   :  { %872 = vmatmul.msk.f32.vlgmr.msra.gmra.mxu0 %vm28_vm0, %v18_v4  ;;  %873 = vmatmul.msk.f32.vlgmr.msra.gmra.mxu1 %vm28_vm0, %v19_v5 }
   0xa   :  { %70 = vmatpush.msrb.mxu1 %v27_v8 }
   0xc   :  { %71 = vmatpush.msrb.mxu1 %v25_v9 }
   0xe   :  { %72 = vmatpush.msrb.mxu1 %v23_v10 }
  0x10   :  { %73 = vmatpush.msrb.mxu1 %v21_v12 }
  0x11   :  { %874 = vmatmul.msk.f32.vlgmr.msrb.gmra.mxu1 %vm28_vm0, %v18_v4 }
  0x19   :  { %875 = vmatmul.msk.f32.gmra.mxu1 %vm28_vm0, %v19_v5 }
  0x86   :  { %v1041_v6 = vpop.f32.mrf.mxu0  ;;  %v1043_v7 = vpop.f32.mrf.mxu1 }
  0x87   :  { %119 = vrot.lane.b32.xlu0 %v1043_v7, %s986_s27  ;;  %277 = vrot.lane.b32.xlu2 %v1041_v6, %s987_s28 }
  0x8e   :  { %v1077_v17 = vpop.f32.mrf.mxu1 }
  0x8f   :  { %91 = vrot.lane.b32.xlu2 %v1041_v6, %s986_s27 }
  0x96   :  { %v1107_v35 = vpop.f32.mrf.mxu1 }
  0x97   :  { %307 = vrot.lane.b32.xlu2 %v1043_v7, %s988_s0 }
  0x9f   :  { %305 = vrot.lane.b32.xlu2 %v1043_v7, %s987_s28 }
  0xe1   :  { %v1062_v11 = vpop.permute.xlu2 %277 }
  0xe9   :  { %v92_v13 = vpop.permute.xlu2 %91 }
  0xea   :  { %876 = vmatpush.xpose.msk.msra.mxu2 %vm93_vm1, %v92_v13 }
  0xed   :  { %877 = vmatmul.msk.f32.vlgmr.msra.gmra.mxu2 %vm93_vm1, %v1041_v6 }
  0xee   :  { %216 = vmatpush.msrb.mxu2 %v1077_v17 }
  0xf1   :  { %v308_v14 = vpop.permute.xlu2 %307 }
  0xf2   :  { %886 = vmatpush.xpose.msk.msrb.mxu0 %vm93_vm1, %v308_v14 }
  0xf9   :  { %v120_v15 = vpop.permute.xlu0 %119  ;;  %v306_v16 = vpop.permute.xlu2 %305 }
  0xfa   :  { %878 = vmatpush.xpose.msk.msra.mxu3 %vm93_vm1, %v120_v15  ;;  %887 = vmatmul.msk.f32.vlgmr.msrb.gmra.mxu0 %vm93_vm1, %v306_v16 }
  0xfd   :  { %879 = vmatmul.msk.f32.vlgmr.msra.gmra.mxu3 %vm93_vm1, %v1043_v7 }
  0xfe   :  { %239 = vmatpush.msrb.mxu3 %v1107_v35 }
 0x170   :  { %v115_v60 = vpop.f32.mrf.mxu2 }
 0x171   :  { %v147_v63 = vsel %vm1080_vm2, -1e+30, %v115_v60  ;;  %v244_v60 = vld [vmem:[%s1237_s2] sm:$0xff] }
 0x172   :  { %v150_v0 = vsel %vm149_vm3, %v147_v63, -inf }
 0x177   :  { %v330_v25 = vpop.f32.mrf.mxu0 }
 0x178   :  { %v1093_v26 = vsel %vm1080_vm2, -1e+30, %v330_v25 }
 0x179   :  { %v338_v27 = vsel %vm149_vm3, %v1093_v26, -inf }
 0x180   :  { %v142_v22 = vpop.f32.mrf.mxu3 }
 0x181   :  { %v148_v23 = vsel %vm1080_vm2, -1e+30, %v142_v22 }
 0x182   :  { %v153_v24 = vsel %vm149_vm3, %v148_v23, -inf }
 0x183   :  { %154 = vmax.xlane.f32.xlu0 %v153_v24 }
 0x197   :  { %384 = vrot.lane.b32.xlu0 %v1077_v17, %s987_s28 }
 0x19f   :  { %472 = vrot.lane.b32.xlu0 %v1041_v6, %s989_s1 }
 0x1c9   :  { %339 = vmax.xlane.f32.xlu0 %v338_v27  ;;  %v437_v27 = vld [vmem:[%s1237_s2 + $0x10] sm:$0xff] }
 0x1dd   :  { %576 = vrot.lane.b32.xlu0 %v1077_v17, %s990_s11 }
 0x1e5   :  { %663 = vrot.lane.b32.xlu0 %v1041_v6, %s991_s12 }
 0x1ed   :  { %689 = vrot.lane.b32.xlu0 %v1043_v7, %s992_s13 }
 0x1f6   :  { %v155_v28 = vpop.xlane.xlu0 %154 }
 0x1f7   :  { %v157_v29 = vsub.f32 %v148_v23, %v155_v28 }
 0x1f9   :  { %v160_v30 = vmul.f32 1.442695, %v157_v29 }
 0x1fb   :  { %928 = vpow2.f32 %v160_v30 }
 0x201   :  { %v929_v31 = vpop.eup %928 }
 0x202   :  { %v165_v32 = vsel %vm149_vm3, %v929_v31, 0.0 }
 0x203   :  { %166 = vadd.xlane.f32.xlu1 %v165_v32 }
 0x209   :  { %v385_v33 = vpop.permute.xlu0 %384 }
 0x20a   :  { %405 = vmatpush.msra.mxu1 %v385_v33 }
 0x211   :  { %v473_v34 = vpop.permute.xlu0 %472 }
 0x212   :  { %892 = vmatpush.xpose.msk.msrb.mxu1 %vm93_vm1, %v473_v34 }
 0x21c   :  { %279 = vrot.lane.b32.xlu1 %v1041_v6, %s988_s0 }
 0x23c   :  { %v340_v57 = vpop.xlane.xlu0 %339 }
 0x23d   :  { %v342_v9 = vsub.f32 %v1093_v26, %v340_v57  ;;  %v438_v26 = vld [vmem:[%s1237_s2 + $0x18] sm:$0xff] }
 0x23e   :  { %459 = vmatpush.msra.mxu0 %v438_v26 }
 0x23f   :  { %v345_v15 = vmul.f32 1.442695, %v342_v9 }
 0x240   :  { %460 = vmatpush.msra.mxu0 %v437_v27 }
 0x24f   :  { %v577_v62 = vpop.permute.xlu0 %576 }
 0x276   :  { %v167_v36 = vpop.xlane.xlu1 %166 }
 0x277   :  { %930 = vrcp.f32 %v167_v36  ;;  %v193_v40 = vand.u32 2147483648, %v167_v36  ;;  %v191_v42 = vand.u32 2147483647, %v167_v36  ;;  %vm187_vm5 = vweird.f32 %v167_v36 }
 0x279   :  { %v194_v44 = vor.u32 1.1754944e-38, %v193_v40  ;;  %vm192_vm7 = vcmp.eq.f32.partialorder %v191_v42, 8.507059e+37 }
 0x27d   :  { %v931_v37 = vpop.eup %930 }
 0x27e   :  { %v183_v38 = vmul.f32 %v931_v37, %v167_v36  ;;  %vm188_vm4 = vweird.f32 %v931_v37 }
 0x27f   :  { %vm189_vm6 = vmor %vm187_vm5, %vm188_vm4 }
 0x280   :  { %v184_v39 = vsub.f32 1.0, %v183_v38 }
 0x282   :  { %v185_v41 = vmul.f32 %v931_v37, %v184_v39 }
 0x284   :  { %v186_v43 = vadd.f32 %v931_v37, %v185_v41 }
 0x286   :  { %v190_v45 = vsel %vm189_vm6, %v931_v37, %v186_v43 }
 0x287   :  { %v195_v46 = vsel %vm192_vm7, %v194_v44, %v190_v45 }
 0x288   :  { %v197_v47 = vmul.f32 %v929_v31, %v195_v46 }
 0x28a   :  { %881 = vmatmul.msk.f32.vlgmr.msrb.gmra.mxu3 %vm149_vm3, %v197_v47 }
 0x28e   :  { %v280_v48 = vpop.permute.xlu1 %279 }
 0x28f   :  { %884 = vmatpush.xpose.msk.msra.mxu3 %vm93_vm1, %v280_v48 }
 0x292   :  { %885 = vmatmul.msk.f32.vlgmr.msra.gmra.mxu3 %vm93_vm1, %v1062_v11 }
 0x30d   :  { %v1114_v49 = vpop.f32.mrf.mxu3 }
 0x315   :  { %v302_v50 = vpop.f32.mrf.mxu3 }
 0x316   :  { %v333_v51 = vsel %vm1080_vm2, -1e+30, %v302_v50 }
 0x317   :  { %v335_v52 = vsel %vm149_vm3, %v333_v51, -inf }
 0x318   :  { %336 = vmax.xlane.f32.xlu2 %v335_v52 }
 0x330   :  { %470 = vrot.lane.b32.xlu2 %v1041_v6, %s990_s11 }
 0x338   :  { %411 = vrot.lane.b32.xlu2 %v1107_v35, %s987_s28 }
 0x38b   :  { %v337_v53 = vpop.xlane.xlu2 %336 }
 0x38c   :  { %v341_v54 = vsub.f32 %v333_v51, %v337_v53 }
 0x38e   :  { %v343_v55 = vmul.f32 1.442695, %v341_v54 }
 0x390   :  { %932 = vpow2.f32 %v343_v55 }
 0x393   :  { %v471_v56 = vpop.permute.xlu2 %470 }
 0x396   :  { %v933_v58 = vpop.eup %932 }
 0x397   :  { %v347_v59 = vsel %vm149_vm3, %v933_v58, 0.0 }
 0x398   :  { %348 = vadd.xlane.f32.xlu1 %v347_v59  ;;  %v245_v59 = vld [vmem:[%s1237_s2 + $0x8] sm:$0xff] }
 0x399   :  { %266 = vmatpush.msra.mxu2 %v245_v59 }
 0x39b   :  { %v412_v61 = vpop.permute.xlu2 %411  ;;  %267 = vmatpush.msra.mxu2 %v244_v60 }
 0x39c   :  { %432 = vmatpush.msrb.mxu3 %v412_v61 }
 0x39e   :  { %597 = vmatpush.msra.mxu3 %v577_v62 }
 0x3a0   :  { %151 = vmax.xlane.f32.xlu1 %v150_v0 }
 0x40b   :  { %v349_v1 = vpop.xlane.xlu1 %348 }
 0x40c   :  { %934 = vrcp.f32 %v349_v1  ;;  %v364_v10 = vand.u32 2147483648, %v349_v1  ;;  %v362_v13 = vand.u32 2147483647, %v349_v1  ;;  %vm358_vm9 = vweird.f32 %v349_v1 }
 0x40e   :  { %v365_v16 = vor.u32 1.1754944e-38, %v364_v10  ;;  %vm363_vm11 = vcmp.eq.f32.partialorder %v362_v13, 8.507059e+37 }
 0x412   :  { %v935_v2 = vpop.eup %934 }
 0x413   :  { %v354_v3 = vmul.f32 %v935_v2, %v349_v1  ;;  %v152_v4 = vpop.xlane.xlu1 %151  ;;  %vm359_vm8 = vweird.f32 %v935_v2 }
 0x414   :  { %v156_v5 = vsub.f32 %v147_v63, %v152_v4  ;;  %vm360_vm10 = vmor %vm358_vm9, %vm359_vm8 }
 0x415   :  { %v355_v8 = vsub.f32 1.0, %v354_v3 }
 0x416   :  { %v158_v11 = vmul.f32 1.442695, %v156_v5 }
 0x417   :  { %v356_v12 = vmul.f32 %v935_v2, %v355_v8 }
 0x418   :  { %936 = vpow2.f32 %v158_v11 }
 0x419   :  { %v357_v14 = vadd.f32 %v935_v2, %v356_v12  ;;  %938 = vpow2.f32 %v345_v15 }
 0x41b   :  { %v361_v18 = vsel %vm360_vm10, %v935_v2, %v357_v14 }
 0x41c   :  { %v366_v19 = vsel %vm363_vm11, %v365_v16, %v361_v18 }
 0x41d   :  { %v381_v20 = vmul.f32 %v933_v58, %v366_v19  ;;  %v664_v58 = vpop.permute.xlu0 %663  ;;  %v1171_v19 = vld [vmem:[%s1238_s3] ss:$0 sm:$0xff] }
 0x41e   :  { %v937_v22 = vpop.eup %936 }
 0x41f   :  { %888 = vmatmul.msk.f32.vlgmr.msra.gmra.mxu1 %vm149_vm3, %v381_v20  ;;  %v162_v23 = vsel %vm149_vm3, %v937_v22, 0.0  ;;  %v939_v24 = vpop.eup %938 }
 0x420   :  { %163 = vadd.xlane.f32.xlu1 %v162_v23  ;;  %v350_v25 = vsel %vm149_vm3, %v939_v24, 0.0 }
 0x425   :  { %v690_v12 = vpop.permute.xlu0 %689 }
 0x427   :  { %893 = vmatmul.msk.f32.vlgmr.msrb.gmra.mxu1 %vm93_vm1, %v471_v56 }
 0x428   :  { %351 = vadd.xlane.f32.xlu1 %v350_v25 }
 0x493   :  { %v164_v28 = vpop.xlane.xlu1 %163 }
 0x494   :  { %940 = vrcp.f32 %v164_v28  ;;  %v179_v34 = vand.u32 2147483648, %v164_v28  ;;  %v177_v37 = vand.u32 2147483647, %v164_v28  ;;  %vm173_vm13 = vweird.f32 %v164_v28 }
 0x496   :  { %v180_v40 = vor.u32 1.1754944e-38, %v179_v34  ;;  %vm178_vm15 = vcmp.eq.f32.partialorder %v177_v37, 8.507059e+37 }
 0x49a   :  { %v941_v29 = vpop.eup %940 }
 0x49b   :  { %v169_v30 = vmul.f32 %v941_v29, %v164_v28  ;;  %v352_v31 = vpop.xlane.xlu1 %351  ;;  %vm174_vm12 = vweird.f32 %v941_v29 }
 0x49c   :  { %942 = vrcp.f32 %v352_v31  ;;  %v407_v32 = vpop.f32.mrf.mxu1  ;;  %vm175_vm14 = vmor %vm173_vm13, %vm174_vm12  ;;  %v378_v48 = vand.u32 2147483648, %v352_v31  ;;  %v376_v52 = vand.u32 2147483647, %v352_v31  ;;  %vm372_vm5 = vweird.f32 %v352_v31 }
 0x49d   :  { %v170_v33 = vsub.f32 1.0, %v169_v30  ;;  %890 = vmatmul.msk.f32.vlgmr.msra.gmra.mxu0 %vm93_vm1, %v407_v32  ;;  %v628_v32 = vld [vmem:[%s1237_s2 + $0x20] sm:$0xff] }
 0x49e   :  { %v379_v54 = vor.u32 1.1754944e-38, %v378_v48  ;;  %vm377_vm7 = vcmp.eq.f32.partialorder %v376_v52, 8.507059e+37 }
 0x49f   :  { %v171_v36 = vmul.f32 %v941_v29, %v170_v33 }
 0x4a1   :  { %v172_v38 = vadd.f32 %v941_v29, %v171_v36 }
 0x4a2   :  { %v943_v39 = vpop.eup %942 }
 0x4a3   :  { %v368_v41 = vmul.f32 %v943_v39, %v352_v31  ;;  %v176_v42 = vsel %vm175_vm14, %v941_v29, %v172_v38  ;;  %vm373_vm4 = vweird.f32 %v943_v39  ;;  %v629_v31 = vld [vmem:[%s1237_s2 + $0x28] sm:$0xff] }
 0x4a4   :  { %v495_v43 = vpop.f32.mrf.mxu1  ;;  %v181_v44 = vsel %vm178_vm15, %v180_v40, %v176_v42  ;;  %vm374_vm6 = vmor %vm372_vm5, %vm373_vm4 }
 0x4a5   :  { %v369_v45 = vsub.f32 1.0, %v368_v41  ;;  %v526_v46 = vsel %vm1080_vm2, -1e+30, %v495_v43  ;;  %v196_v47 = vmul.f32 %v937_v22, %v181_v44 }
 0x4a6   :  { %v528_v50 = vsel %vm149_vm3, %v526_v46, -inf }
 0x4a7   :  { %v370_v51 = vmul.f32 %v943_v39, %v369_v45  ;;  %880 = vmatmul.msk.f32.vlgmr.msrb.gmra.mxu2 %vm149_vm3, %v196_v47  ;;  %529 = vmax.xlane.f32.xlu1 %v528_v50 }
 0x4a9   :  { %v371_v53 = vadd.f32 %v943_v39, %v370_v51 }
 0x4ab   :  { %v375_v55 = vsel %vm374_vm6, %v943_v39, %v371_v53 }
 0x4ac   :  { %v380_v56 = vsel %vm377_vm7, %v379_v54, %v375_v55 }
 0x4ad   :  { %v382_v57 = vmul.f32 %v939_v24, %v380_v56 }
 0x4af   :  { %889 = vmatmul.msk.f32.vlgmr.msrb.gmra.mxu3 %vm149_vm3, %v382_v57  ;;  %v922_v57 = vpack.i.bf16 %v1107_v35, %v1077_v17 }
 0x4b0   :  { %900 = vmatpush.xpose.msk.msrb.mxu3 %vm93_vm1, %v664_v58 }
 0x4c0   :  { %500 = vrot.lane.b32.xlu1 %v1043_v7, %s989_s1 }
 0x4c8   :  { %498 = vrot.lane.b32.xlu1 %v1043_v7, %s990_s11 }
 0x4d0   :  { %661 = vrot.lane.b32.xlu1 %v1041_v6, %s992_s13 }
 0x51a   :  { %v530_v61 = vpop.xlane.xlu1 %529  ;;  %v462_v24 = vpop.f32.mrf.mxu0 }
 0x51b   :  { %v534_v62 = vsub.f32 %v526_v46, %v530_v61 }
 0x51d   :  { %v536_v63 = vmul.f32 1.442695, %v534_v62 }
 0x51f   :  { %944 = vpow2.f32 %v536_v63 }
 0x525   :  { %v945_v0 = vpop.eup %944 }
 0x526   :  { %v540_v1 = vsel %vm149_vm3, %v945_v0, 0.0 }
 0x527   :  { %541 = vadd.xlane.f32.xlu2 %v540_v1 }
 0x52a   :  { %v218_v2 = vpop.f32.mrf.mxu2 }
 0x52b   :  { %882 = vmatmul.msk.f32.vlgmr.msra.gmra.mxu2 %vm93_vm1, %v218_v2 }
 0x532   :  { %v501_v6 = vpop.permute.xlu1 %500  ;;  %v434_v3 = vpop.f32.mrf.mxu3 }
 0x533   :  { %883 = vmatmul.msk.f32.gmra.mxu2 %vm93_vm1, %v1114_v49  ;;  %891 = vmatmul.msk.f32.gmra.mxu0 %vm93_vm1, %v434_v3 }
 0x534   :  { %894 = vmatpush.xpose.msk.msrb.mxu2 %vm93_vm1, %v501_v6 }
 0x538   :  { %650 = vmatpush.msra.mxu2 %v629_v31 }
 0x53a   :  { %v499_v4 = vpop.permute.xlu1 %498  ;;  %651 = vmatpush.msra.mxu2 %v628_v32 }
 0x53b   :  { %895 = vmatmul.msk.f32.vlgmr.msrb.gmra.mxu2 %vm93_vm1, %v499_v4 }
 0x53f   :  { %691 = vrot.lane.b32.xlu2 %v1043_v7, %s991_s12 }
 0x542   :  { %v662_v26 = vpop.permute.xlu1 %661 }
 0x59a   :  { %v542_v5 = vpop.xlane.xlu2 %541 }
 0x59b   :  { %946 = vrcp.f32 %v542_v5  ;;  %v557_v49 = vand.u32 2147483648, %v542_v5  ;;  %v555_v14 = vand.u32 2147483647, %v542_v5  ;;  %vm551_vm9 = vweird.f32 %v542_v5 }
 0x59d   :  { %v558_v16 = vor.u32 1.1754944e-38, %v557_v49  ;;  %vm556_vm11 = vcmp.eq.f32.partialorder %v555_v14, 8.507059e+37 }
 0x5a1   :  { %v947_v8 = vpop.eup %946 }
 0x5a2   :  { %v547_v9 = vmul.f32 %v947_v8, %v542_v5  ;;  %v692_v10 = vpop.permute.xlu2 %691  ;;  %vm552_vm8 = vweird.f32 %v947_v8 }
 0x5a3   :  { %902 = vmatpush.xpose.msk.msrb.mxu0 %vm93_vm1, %v692_v10  ;;  %vm553_vm10 = vmor %vm551_vm9, %vm552_vm8 }
 0x5a4   :  { %v548_v11 = vsub.f32 1.0, %v547_v9 }
 0x5a6   :  { %v549_v13 = vmul.f32 %v947_v8, %v548_v11  ;;  %903 = vmatmul.msk.f32.vlgmr.msrb.gmra.mxu0 %vm93_vm1, %v690_v12 }
 0x5a8   :  { %v550_v15 = vadd.f32 %v947_v8, %v549_v13 }
 0x5aa   :  { %v554_v7 = vsel %vm553_vm10, %v947_v8, %v550_v15 }
 0x5ab   :  { %v559_v18 = vsel %vm556_vm11, %v558_v16, %v554_v7 }
 0x5ac   :  { %v574_v20 = vmul.f32 %v945_v0, %v559_v18 }
 0x5ae   :  { %v269_v22 = vpop.f32.mrf.mxu2  ;;  %896 = vmatmul.msk.f32.vlgmr.msra.gmra.mxu3 %vm149_vm3, %v574_v20 }
 0x5af   :  { %v275_v23 = vadd.f32 %v1171_v19, %v269_v22 }
 0x5b0   :  { %v1189_v33 = vpop.f32.mrf.mxu0 }
 0x5b1   :  { %v1175_v25 = vadd.f32 %v462_v24, %v275_v23 }
 0x5b6   :  { %v1177_v27 = vpop.f32.mrf.mxu2  ;;  %901 = vmatmul.msk.f32.vlgmr.msrb.gmra.mxu3 %vm93_vm1, %v662_v26 }
 0x5be   :  { %v523_v28 = vpop.f32.mrf.mxu2 }
 0x5bf   :  { %v527_v29 = vsel %vm1080_vm2, -1e+30, %v523_v28 }
 0x5c0   :  { %v531_v30 = vsel %vm149_vm3, %v527_v29, -inf }
 0x5c1   :  { %532 = vmax.xlane.f32.xlu1 %v531_v30 }
 0x623   :  { %v714_v34 = vpop.f32.mrf.mxu0 }
 0x624   :  { %v718_v36 = vsel %vm1080_vm2, -1e+30, %v714_v34 }
 0x625   :  { %v722_v37 = vsel %vm149_vm3, %v718_v36, -inf }
 0x626   :  { %723 = vmax.xlane.f32.xlu2 %v722_v37 }
 0x631   :  { %v599_v38 = vpop.f32.mrf.mxu3 }
 0x632   :  { %898 = vmatmul.msk.f32.vlgmr.msra.gmra.mxu2 %vm93_vm1, %v599_v38  ;;  %v820_v38 = vld [vmem:[%s1237_s2 + $0x38] sm:$0xff] }
 0x633   :  { %841 = vmatpush.msra.mxu0 %v820_v38 }
 0x634   :  { %v533_v39 = vpop.xlane.xlu1 %532 }
 0x635   :  { %v535_v40 = vsub.f32 %v527_v29, %v533_v39  ;;  %v819_v39 = vld [vmem:[%s1237_s2 + $0x30] sm:$0xff]  ;;  %s993_s2 = smov [#allocation2]  }
 0x636   :  { %842 = vmatpush.msra.mxu0 %v819_v39  ;;  %s858_s30 = sshll.u32 %s993_s2, 4  ;;  %s859_s30 = int_to_ptr.vmem [resolvable:$true] %s858_s30 }
 0x637   :  { %v538_v41 = vmul.f32 1.442695, %v535_v40 }
 0x639   :  { %948 = vpow2.f32 %v538_v41  ;;  %v686_v42 = vpop.f32.mrf.mxu3 }
 0x63a   :  { %v717_v43 = vsel %vm1080_vm2, -1e+30, %v686_v42 }
 0x63b   :  { %v719_v44 = vsel %vm149_vm3, %v717_v43, -inf }
 0x63c   :  { %720 = vmax.xlane.f32.xlu0 %v719_v44 }
 0x63f   :  { %v1198_v45 = vpop.eup %948 }
 0x640   :  { %v543_v46 = vsel %vm149_vm3, %v1198_v45, 0.0 }
 0x641   :  { %544 = vadd.xlane.f32.xlu1 %v543_v46  ;;  %v276_v46 = vadd.f32 %v1171_v19, %v1177_v27 }
 0x699   :  { %v724_v47 = vpop.xlane.xlu2 %723 }
 0x69a   :  { %v726_v48 = vsub.f32 %v718_v36, %v724_v47 }
 0x69c   :  { %v729_v50 = vmul.f32 1.442695, %v726_v48 }
 0x69e   :  { %950 = vpow2.f32 %v729_v50  ;;  %v469_v50 = vadd.f32 %v1189_v33, %v276_v46 }
 0x6a4   :  { %v951_v51 = vpop.eup %950 }
 0x6a5   :  { %v734_v52 = vsel %vm149_vm3, %v951_v51, 0.0 }
 0x6a6   :  { %735 = vadd.xlane.f32.xlu1 %v734_v52 }
 0x6af   :  { %v721_v53 = vpop.xlane.xlu0 %720 }
 0x6b0   :  { %v725_v21 = vsub.f32 %v717_v43, %v721_v53 }
 0x6b2   :  { %v727_v54 = vmul.f32 1.442695, %v725_v21 }
 0x6b4   :  { %952 = vpow2.f32 %v727_v54  ;;  %v545_v58 = vpop.xlane.xlu1 %544 }
 0x6b5   :  { %v571_v15 = vand.u32 2147483648, %v545_v58  ;;  %vm565_vm4 = vweird.f32 %v545_v58  ;;  %v569_v7 = vand.u32 2147483647, %v545_v58  ;;  %v653_v43 = vpop.f32.mrf.mxu2 }
 0x6b6   :  { %v659_v44 = vadd.f32 %v653_v43, %v1175_v25 }
 0x6b7   :  { %v572_v22 = vor.u32 1.1754944e-38, %v571_v15  ;;  %vm570_vm6 = vcmp.eq.f32.partialorder %v569_v7, 8.507059e+37 }
 0x6ba   :  { %v1203_v55 = vpop.eup %952 }
 0x6bb   :  { %v731_v56 = vsel %vm149_vm3, %v1203_v55, 0.0 }
 0x6bc   :  { %732 = vadd.xlane.f32.xlu0 %v731_v56 }
 0x6bf   :  { %923 = vrot.lane.b32.xlu1 %v922_v57, %s992_s13 }
 0x6d0   :  { %602 = vrot.lane.b32.xlu0 %v1107_v35, %s990_s11 }
 0x719   :  { %v736_v59 = vpop.xlane.xlu1 %735 }
 0x71a   :  { %954 = vrcp.f32 %v736_v59  ;;  %v762_v2 = vand.u32 2147483648, %v736_v59  ;;  %vm756_vm12 = vweird.f32 %v736_v59  ;;  %v760_v6 = vand.u32 2147483647, %v736_v59 }
 0x71b   :  { %956 = vrcp.f32 %v545_v58 }
 0x71c   :  { %v763_v4 = vor.u32 1.1754944e-38, %v762_v2  ;;  %vm761_vm14 = vcmp.eq.f32.partialorder %v760_v6, 8.507059e+37 }
 0x720   :  { %v955_v60 = vpop.eup %954 }
 0x721   :  { %v752_v61 = vmul.f32 %v955_v60, %v736_v59  ;;  %v957_v0 = vpop.eup %956  ;;  %vm757_vm2 = vweird.f32 %v955_v60 }
 0x722   :  { %v561_v17 = vmul.f32 %v957_v0, %v545_v58  ;;  %vm758_vm13 = vmor %vm756_vm12, %vm757_vm2  ;;  %vm566_vm15 = vweird.f32 %v957_v0 }
 0x723   :  { %v753_v62 = vsub.f32 1.0, %v752_v61  ;;  %vm567_vm5 = vmor %vm565_vm4, %vm566_vm15 }
 0x724   :  { %v562_v5 = vsub.f32 1.0, %v561_v17 }
 0x725   :  { %v754_v63 = vmul.f32 %v955_v60, %v753_v62 }
 0x726   :  { %v563_v12 = vmul.f32 %v957_v0, %v562_v5 }
 0x727   :  { %v755_v1 = vadd.f32 %v955_v60, %v754_v63 }
 0x728   :  { %v564_v14 = vadd.f32 %v957_v0, %v563_v12 }
 0x729   :  { %v759_v3 = vsel %vm758_vm13, %v955_v60, %v755_v1 }
 0x72a   :  { %v764_v8 = vsel %vm761_vm14, %v763_v4, %v759_v3  ;;  %v568_v18 = vsel %vm567_vm5, %v957_v0, %v564_v14 }
 0x72b   :  { %v766_v11 = vmul.f32 %v951_v51, %v764_v8  ;;  %v573_v23 = vsel %vm570_vm6, %v572_v22, %v568_v18 }
 0x72c   :  { %v575_v30 = vmul.f32 %v1198_v45, %v573_v23 }
 0x72f   :  { %v733_v35 = vpop.xlane.xlu0 %732 }
 0x730   :  { %958 = vrcp.f32 %v733_v35  ;;  %v748_v26 = vand.u32 2147483648, %v733_v35  ;;  %vm742_vm8 = vweird.f32 %v733_v35  ;;  %v746_v28 = vand.u32 2147483647, %v733_v35 }
 0x731   :  { %v924_v9 = vpop.permute.xlu1 %923 }
 0x732   :  { %v926_v10 = vunpack.i.h.bf16 %v924_v9  ;;  %v925_v31 = vunpack.i.l.bf16 %v924_v9  ;;  %v749_v34 = vor.u32 1.1754944e-38, %v748_v26  ;;  %vm747_vm10 = vcmp.eq.f32.partialorder %v746_v28, 8.507059e+37 }
 0x734   :  { %814 = vmatpush.msra.mxu3 %v926_v10 }
 0x735   :  { %905 = vmatmul.msk.f32.vlgmr.msra.gmra.mxu3 %vm149_vm3, %v766_v11 }
 0x736   :  { %v959_v49 = vpop.eup %958 }
 0x737   :  { %v738_v13 = vmul.f32 %v959_v49, %v733_v35  ;;  %vm743_vm7 = vweird.f32 %v959_v49 }
 0x738   :  { %vm744_vm9 = vmor %vm742_vm8, %vm743_vm7 }
 0x739   :  { %v739_v16 = vsub.f32 1.0, %v738_v13 }
 0x73b   :  { %v740_v20 = vmul.f32 %v959_v49, %v739_v16 }
 0x73d   :  { %v741_v24 = vadd.f32 %v959_v49, %v740_v20 }
 0x73f   :  { %v745_v32 = vsel %vm744_vm9, %v959_v49, %v741_v24 }
 0x740   :  { %v750_v36 = vsel %vm747_vm10, %v749_v34, %v745_v32 }
 0x741   :  { %v765_v37 = vmul.f32 %v1203_v55, %v750_v36 }
 0x742   :  { %v603_v29 = vpop.permute.xlu0 %602 }
 0x743   :  { %623 = vmatpush.msra.mxu1 %v603_v29 }
 0x744   :  { %897 = vmatmul.msk.f32.vlgmr.msra.gmra.mxu1 %vm149_vm3, %v575_v30 }
 0x745   :  { %788 = vmatpush.msrb.mxu1 %v925_v31 }
 0x74c   :  { %904 = vmatmul.msk.f32.vlgmr.msrb.gmra.mxu1 %vm149_vm3, %v765_v37 }
 0x7b8   :  { %v816_v42 = vpop.f32.mrf.mxu3 }
 0x7c1   :  { %v625_v40 = vpop.f32.mrf.mxu1 }
 0x7c2   :  { %899 = vmatmul.msk.f32.gmra.mxu2 %vm93_vm1, %v625_v40 }
 0x7c9   :  { %v790_v41 = vpop.f32.mrf.mxu1 }
 0x7ca   :  { %906 = vmatmul.msk.f32.vlgmr.msra.gmra.mxu0 %vm93_vm1, %v790_v41 }
 0x7d2   :  { %907 = vmatmul.msk.f32.gmra.mxu0 %vm93_vm1, %v816_v42 }
 0x845   :  { %v656_v48 = vpop.f32.mrf.mxu2 }
 0x846   :  { %v660_v51 = vadd.f32 %v656_v48, %v469_v50 }
 0x847   :  { %v844_v45 = vpop.f32.mrf.mxu0 }
 0x848   :  { %v850_v47 = vadd.f32 %v844_v45, %v659_v44 }
 0x84a   :  { %852 = vst.msk [vmem:[#allocation2] sm:$0xff] %vm28_vm0, %v850_v47 }
 0x84f   :  { %v847_v52 = vpop.f32.mrf.mxu0 }
 0x850   :  { %v851_v25 = vadd.f32 %v847_v52, %v660_v51 }
 0x852   :  { %853 = vst.msk [vmem:[#allocation2 + $0x8] sm:$0xff] %vm28_vm0, %v851_v25 }
 0x853   :  { %866 = dma.vmem_to_hbm [thread:$0]  %s859_s30, 256, %s861_s7, [#allocation3], %s994_s8, %s994_s8, %s995_s9  }
 0x854   :  { %984 = dma.done.wait [#allocation3], 256  }
 0x855   :  { %985 = vsyncadd [#allocation3], 4294967040 }
 0x856   :  { %871 = vsyncpa [#allocation3], 1 }

</bundles_post_ra>
